<compile_context>
chip_gen: v5e
topology: v5e:2x2
jax: 0.10.0
libtpu: 0.0.40
codegen_flags: <defaults>
</compile_context>

<pallas_src>
import math
import warnings

import numpy as np
import jax
import jax.numpy as jnp
from jax.experimental import pallas as pl
from jax.experimental.pallas import tpu as pltpu


# --------------------------------------------------------------------------------------
# Pallas kernel: one fused real matmul per lane tile.
# --------------------------------------------------------------------------------------
def _qop_kernel(b_ref, s_ref, o_ref):
    # B = [[Ur, -Ui], [Ui, Ur]],  S = [Sr ; Si]  ->  B @ S = [Or ; Oi]
    # Precision pinned to full f32: the kernel is HBM-bound, so the extra passes are free.
    o_ref[...] = jnp.dot(b_ref[...], s_ref[...],
                         preferred_element_type=jnp.float32,
                         precision=jax.lax.Precision.HIGHEST)


def _round_up(x, mult):
    return ((x + mult - 1) // mult) * mult


def _vmem_budgets():
    """Return (double_buffer_budget_bytes, vmem_limit_bytes) per TPU generation.

    v5e/v6e: 128 MiB VMEM per core -> fat tiles.  v7x: 64 MiB -> conservative budget.
    Falls back to v7x-safe numbers if the hardware query is unavailable.
    """
    cap = None
    try:
        cap = int(getattr(pltpu.get_tpu_info(), "vmem_capacity_bytes"))
    except Exception:
        cap = None
    if cap:
        buf = max(8 << 20, min(cap // 3, 48 << 20))
        limit = max(buf + (4 << 20), min(buf + (16 << 20), cap - (8 << 20)))
    else:
        buf, limit = 24 << 20, 40 << 20
    return buf, limit


def _pick_lane_tile(td, m, buf_budget):
    """Lane tile (multiple of 128 or full-extent): big enough to amortize per-step
    overhead (~budget/6 bytes per input tile), small enough that double-buffered
    in+out tiles stay within `buf_budget`, and leaving >=2 grid steps when possible
    (v7x megacore sharding + DMA/compute overlap)."""
    if m <= 512:
        return m                                             # single full-extent block
    per_col = 2 * td * 4                                     # in + out column, f32
    tm_budget = max(128, (buf_budget // (2 * per_col) // 128) * 128)   # double-buffered
    tm_target = max(128, ((buf_budget // 6) // (td * 4) // 128) * 128)
    tm = min(tm_budget, tm_target, _round_up(m, 128))
    if -(-m // tm) < 2:                                      # keep >= 2 grid steps
        tm = max(128, _round_up(-(-m // 2), 128))
    return tm


def _apply_stacked_unitary(b_mat, s):
    """o = B @ S on the MXU.  B:(2d,2d) f32,  S:(2d,M) f32 ([real plane ; imag plane])."""
    td, m = s.shape
    buf_budget, vmem_limit = _vmem_budgets()
    tm = _pick_lane_tile(td, m, buf_budget)
    grid = (pl.cdiv(m, tm),)

    cost = pl.CostEstimate(
        flops=int(2 * td * td * m),
        transcendentals=0,
        bytes_accessed=int(4 * (td * td + 2 * td * m)),
    )

    return pl.pallas_call(
        _qop_kernel,
        out_shape=jax.ShapeDtypeStruct((td, m), jnp.float32),
        grid_spec=pltpu.PrefetchScalarGridSpec(
            num_scalar_prefetch=0,
            grid=grid,
            in_specs=[pl.BlockSpec((td, td), lambda j: (0, 0)),   # gate: resident
                      pl.BlockSpec((td, tm), lambda j: (0, j))],  # state lane tile
            out_specs=pl.BlockSpec((td, tm), lambda j: (0, j)),   # lane-dense output
        ),
        compiler_params=pltpu.CompilerParams(
            dimension_semantics=("parallel",),
            vmem_limit_bytes=int(vmem_limit)),
        cost_estimate=cost,
    )(b_mat, s)


# --------------------------------------------------------------------------------------
# Module wrapper
# --------------------------------------------------------------------------------------
def _permute_basis(op, qubits):
    """Express an operator whose tensor axes follow the order of `qubits` over
    sorted(qubits) (pyqtorch permute_basis semantics)."""
    k = len(qubits)
    order = tuple(sorted(range(k), key=lambda i: qubits[i]))
    perm = order + tuple(k + o for o in order)
    return op.reshape((2,) * (2 * k)).transpose(perm).reshape(2 ** k, 2 ** k)


class QuantumOperation:
    """JAX/Pallas port of pyqtorch.QuantumOperation (default operator_function, no noise)."""

    def __init__(self, operation, qubit_support):
        if isinstance(qubit_support, int):
            qubit_support = (qubit_support,)
        qubit_support = tuple(int(q) for q in qubit_support)
        operation = jnp.asarray(operation)
        if operation.ndim != 2 or operation.shape[0] != operation.shape[1]:
            raise ValueError("operation must be a square matrix")
        k = int(round(math.log2(operation.shape[0])))
        if len(qubit_support) != k or 2 ** k != operation.shape[0]:
            raise ValueError(
                "The operation shape should match the length of the qubit_support.")
        self._given_support = qubit_support
        self.qubit_support = tuple(sorted(qubit_support))
        self.operation = operation.astype(jnp.complex64)
        # pyqtorch: operator axes follow the *given* support order; permute the basis so
        # it can be applied to the sorted target axes (matters e.g. for CNOT(2, 0)).
        op = self.operation
        if self._given_support != self.qubit_support:
            op = _permute_basis(op, self._given_support)
        self._sorted_operation = op

    def tensor(self):
        # pyqtorch tensor(): basis-permuted operator with a trailing operator-batch dim
        return self._sorted_operation[..., None]

    def forward(self, state, values=None, embedding=None):
        # TODO(synk): noise / DensityMatrix path (apply_operator_dm) not implemented.
        del values, embedding
        n_qubits = state.ndim - 1
        batch = state.shape[-1]
        if state.dtype == jnp.complex128:
            warnings.warn("QuantumOperation Pallas kernel computes in float32 real/imag "
                          "planes; complex128 inputs lose precision.", stacklevel=2)
        targets = self.qubit_support
        k = len(targets)
        d = 2 ** k
        rest = tuple(q for q in range(n_qubits) if q not in targets)

        # Fold leading rest qubits into the gate (U x I) while the stacked row count 2*d
        # would under-fill the 8-sublane vregs (only triggers for k == 1).
        fold = 0
        while 2 * d * (2 ** fold) < 8 and fold < len(rest):
            fold += 1
        d_eff = d * (2 ** fold)

        # ---- complex -> stacked f32 planes, fused by XLA with the qubit permutation ----
        sr = jnp.real(state).astype(jnp.float32)
        si = jnp.imag(state).astype(jnp.float32)
        s = jnp.stack([sr, si], axis=0)                       # (2, 2,...,2, batch)
        perm = (0,) + tuple(t + 1 for t in targets) + \
            tuple(r + 1 for r in rest) + (n_qubits + 1,)
        if perm != tuple(range(n_qubits + 2)):                # skip identity transpose
            s = jnp.transpose(s, perm)
        s = s.reshape(2 * d_eff, -1)                          # (2d_eff, M) = [Sr ; Si]

        # ---- real 2d_eff x 2d_eff embedding of the (possibly folded) complex gate ----
        u = self._sorted_operation
        if fold:
            u = jnp.kron(u, jnp.eye(2 ** fold, dtype=u.dtype))
        ur = jnp.real(u).astype(jnp.float32)
        ui = jnp.imag(u).astype(jnp.float32)
        b_mat = jnp.block([[ur, -ui], [ui, ur]])              # (2d_eff, 2d_eff)

        o = _apply_stacked_unitary(b_mat, s)                  # (2d_eff, M) = [Or ; Oi]

        # ---- recombine complex and undo the qubit permutation ----
        o = o.reshape((2,) + (2,) * n_qubits + (batch,))
        out = jax.lax.complex(o[0], o[1])                     # order: targets + rest + batch
        inv = tuple(int(i) for i in np.argsort(np.asarray(targets + rest + (n_qubits,))))
        if inv != tuple(range(n_qubits + 1)):
            out = jnp.transpose(out, inv)
        return out.astype(state.dtype)

    __call__ = forward


def _reference_apply_operator(state, operation, qubit_support):
    """Plain-JAX replica of pyqtorch.apply_operator semantics (operator batch = 1)."""
    k = len(qubit_support)
    op = operation.reshape((2,) * (2 * k))
    out = jnp.tensordot(op, state, axes=(tuple(range(k, 2 * k)), qubit_support))
    return jnp.moveaxis(out, tuple(range(k)), qubit_support)


if __name__ == "__main__":
    n_qubits = 8
    batch = 8

    # deterministic normalized input state, shape (2,)*n_qubits + (batch,), complex64
    key = jax.random.PRNGKey(0)
    kr, ki = jax.random.split(key)
    shape = (2,) * n_qubits + (batch,)
    st = (jax.random.normal(kr, shape, dtype=jnp.float32)
          + 1j * jax.random.normal(ki, shape, dtype=jnp.float32)).astype(jnp.complex64)
    norm = jnp.sqrt(jnp.sum(jnp.abs(st) ** 2, axis=tuple(range(n_qubits)), keepdims=True))
    st = st / norm

    H = (1.0 / np.sqrt(2.0)) * np.array([[1, 1], [1, -1]], dtype=np.complex64)

    def rx(t):
        c, s = np.cos(t / 2), np.sin(t / 2)
        return np.array([[c, -1j * s], [-1j * s, c]], dtype=np.complex64)

    def rz(t):
        return np.array([[np.exp(-1j * t / 2), 0], [0, np.exp(1j * t / 2)]],
                        dtype=np.complex64)

    # --- test 1: k = 3 gate on qubits (2, 3, 4) ---
    U3 = np.kron(np.kron(H, rx(0.3)), rz(0.7)).astype(np.complex64)
    out1 = jax.block_until_ready(QuantumOperation(U3, (2, 3, 4))(st))
    ref1 = _reference_apply_operator(st, jnp.asarray(U3), (2, 3, 4))
    if not np.allclose(np.asarray(out1), np.asarray(ref1), atol=1e-5, rtol=1e-5):
        raise AssertionError("k=3 QuantumOperation mismatch vs reference")

    # --- test 2: k = 1 gate (exercises the U x I sublane fold) ---
    U1 = rx(1.1)
    out2 = jax.block_until_ready(QuantumOperation(U1, 5)(st))
    ref2 = _reference_apply_operator(st, jnp.asarray(U1), (5,))
    if not np.allclose(np.asarray(out2), np.asarray(ref2), atol=1e-5, rtol=1e-5):
        raise AssertionError("k=1 QuantumOperation mismatch vs reference")

    # --- test 3: unsorted support (CNOT with control=2, target=0) -> basis permutation ---
    CNOT = np.array([[1, 0, 0, 0], [0, 1, 0, 0],
                     [0, 0, 0, 1], [0, 0, 1, 0]], dtype=np.complex64)   # control = first axis
    out3 = jax.block_until_ready(QuantumOperation(CNOT, (2, 0))(st))
    CNOT_sorted = np.array([[1, 0, 0, 0], [0, 0, 0, 1],
                            [0, 0, 1, 0], [0, 1, 0, 0]], dtype=np.complex64)
    ref3 = _reference_apply_operator(st, jnp.asarray(CNOT_sorted), (0, 2))
    if not np.allclose(np.asarray(out3), np.asarray(ref3), atol=1e-5, rtol=1e-5):
        raise AssertionError("unsorted-support QuantumOperation mismatch vs reference")

    print("KERNEL_OK")
</pallas_src>

<mosaic_0001>
module attributes {stable_mosaic.version = 11 : i64} {
  func.func @_qop_kernel(%arg0: i32, %arg1: memref<16x16xf32, #tpu.memory_space<vmem>>, %arg2: memref<16x256xf32, #tpu.memory_space<vmem>>, %arg3: memref<16x256xf32, #tpu.memory_space<vmem>>) attributes {dimension_semantics = [#tpu.dimension_semantics<parallel>], iteration_bounds = array<i64: 1>, scalar_prefetch = 0 : i64, scratch_operands = 0 : i64, tpu.core_type = #tpu.core_type<tc>, window_params = [{pipeline_mode = #tpu.pipeline_mode<synchronous>, transform_indices = @transform_0, window_bounds = array<i64: 16, 16>}, {transform_indices = @transform_1, window_bounds = array<i64: 16, 256>}, {transform_indices = @transform_2, window_bounds = array<i64: 16, 256>}]} {
    %c0 = arith.constant 0 : index
    %c0_0 = arith.constant 0 : index
    %0 = vector.load %arg1[%c0, %c0_0] : memref<16x16xf32, #tpu.memory_space<vmem>>, vector<16x16xf32>
    %c0_1 = arith.constant 0 : index
    %c0_2 = arith.constant 0 : index
    %1 = vector.load %arg2[%c0_1, %c0_2] : memref<16x256xf32, #tpu.memory_space<vmem>>, vector<16x256xf32>
    %cst = arith.constant dense<0.000000e+00> : vector<16x256xf32>
    %2 = tpu.matmul %0, %1, %cst {dimension_numbers = #tpu.dot_dimension_numbers<[1], [0], [0], [1], [0, 0, 1, 1], [], []>, precision = #tpu.contract_precision<fp32>} : vector<16x16xf32>, vector<16x256xf32>, vector<16x256xf32> -> vector<16x256xf32>
    %c0_3 = arith.constant 0 : index
    %c0_4 = arith.constant 0 : index
    %3 = vector.load %arg3[%c0_3, %c0_4] : memref<16x256xf32, #tpu.memory_space<vmem>>, vector<16x256xf32>
    tpu.vector_store %arg3[%c0_3, %c0_4], %2 {strides = array<i32>} : memref<16x256xf32, #tpu.memory_space<vmem>>, vector<16x256xf32>,
    return
  }
  func.func @transform_0(%arg0: i32) -> (i32, i32) {
    %c0_i32 = arith.constant 0 : i32
    %c0_i32_0 = arith.constant 0 : i32
    %c0_i32_1 = arith.constant 0 : i32
    return %c0_i32, %c0_i32_0 : i32, i32
  }
  func.func @transform_1(%arg0: i32) -> (i32, i32) {
    %c0_i32 = arith.constant 0 : i32
    %c0_i32_0 = arith.constant 0 : i32
    return %c0_i32, %arg0 : i32, i32
  }
  func.func @transform_2(%arg0: i32) -> (i32, i32) {
    %c0_i32 = arith.constant 0 : i32
    %c0_i32_0 = arith.constant 0 : i32
    return %c0_i32, %arg0 : i32, i32
  }
}

</mosaic_0001>

<bundles_post_ra>
// kernel: tpu_custom_call.1
= control target key start
LH: loop header
LB: loop body
LE: loop exit
PB: predicated region body
PF: predicated region fallthrough
CT: control target
= control target key end

     0   :  { %7 = vsyncpa [#allocation3], 0  ;;  %s601_s0 = inlined_call_operand.hbm [shape: f32[16,16], index: 0, kind: input, shape index: {}]   ;;  %s602_s1 = inlined_call_operand.hbm [shape: f32[16,256], index: 1, kind: input, shape index: {}]   ;;  %s603_s2 = inlined_call_operand.hbm [shape: f32[16,256], index: 2, kind: output, shape index: {}]  }
   0x1   :  { %8 = vsyncpa [#allocation6], 0 }
   0x2   :  { %9 = vsyncpa [#allocation4], 0  ;;  %s14_s11 = sshll.u32 %s601_s0, 4  ;;  %s546_s12 = smov [#allocation2]   ;;  %s15_s11 = int_to_ptr.hbm [resolvable:$true] %s14_s11 }
   0x3   :  { %s16_s13 = sshll.u32 %s546_s12, 4  ;;  %s27_s16 = sshll.u32 %s602_s1, 4  ;;  %s17_s13 = int_to_ptr.vmem [resolvable:$true] %s16_s13  ;;  %s28_s16 = int_to_ptr.hbm [resolvable:$true] %s27_s16 }
   0x4   :  { %s547_s17 = smov 128   ;;  %s548_s18 = smov 8  }
   0x5   :  { %22 = dma.hbm_to_vmem [thread:$0]  %s15_s11, 256, %s17_s13, [#allocation3], %s547_s17, %s547_s17, %s548_s18  }
   0x6   :  { %s549_s19 = smov [#allocation5]   ;;  %s550_s21 = smov 256  }
   0x7   :  { %s29_s20 = sshll.u32 %s549_s19, 4  ;;  %s551_s22 = smov 16   ;;  %s30_s20 = int_to_ptr.vmem [resolvable:$true] %s29_s20 }
   0x8   :  { %35 = dma.hbm_to_vmem [thread:$0]  %s28_s16, 512, %s30_s20, [#allocation6], %s550_s21, %s550_s21, %s551_s22  }
   0x9   :  { %540 = dma.done.wait [#allocation3], 256  }
   0xa   :  { %541 = vsyncadd [#allocation3], 4294967040 }
   0xb   :  { %542 = dma.done.wait [#allocation6], 512  }
   0xc   :  { %543 = vsyncadd [#allocation6], 4294966784  ;;  %vm50_vm0 = vcmask 130048   ;;  %v48_v0 = vld [vmem:[#allocation5 + $0x10] sm:$0xff]  ;;  %v46_v1 = vld [vmem:[#allocation5] sm:$0xff]  ;;  %s552_s0 = smov [#allocation7]  }
   0xd   :  { %v44_v2 = vld [vmem:[#allocation2] sm:$0xff]  ;;  %v71_v3 = vand.u32 4294901760, %v48_v0  ;;  %v73_v4 = vand.u32 4294901760, %v46_v1  ;;  %v49_v6 = vld [vmem:[#allocation5 + $0x18] sm:$0xff]  ;;  %v47_v8 = vld [vmem:[#allocation5 + $0x8] sm:$0xff]  ;;  %s445_s1 = sshll.u32 %s552_s0, 4  ;;  %s446_s1 = int_to_ptr.vmem [resolvable:$true] %s445_s1 }
   0xe   :  { %v52_v5 = vsel %vm50_vm0, %v44_v2, 0  ;;  %v45_v7 = vld [vmem:[#allocation2 + $0x8] sm:$0xff]  ;;  %v261_v10 = vand.u32 4294901760, %v49_v6  ;;  %v263_v12 = vand.u32 4294901760, %v47_v8  ;;  %s447_s25 = sshll.u32 %s603_s2, 4  ;;  %s448_s25 = int_to_ptr.hbm [resolvable:$true] %s447_s25 }
   0xf   :  { %v577_v9 = vand.u32 4294901760, %v52_v5  ;;  %v55_v11 = vsel %vm50_vm0, %v45_v7, 0  ;;  %v107_v13 = vsub.f32 %v48_v0, %v71_v3  ;;  %173 = vmatpush.msra.mxu3 %v71_v3  ;;  %72 = vmatpush.msra.mxu0 %v71_v3  ;;  %v113_v14 = vsub.f32 %v46_v1, %v73_v4 }
  0x10   :  { %v579_v15 = vand.u32 4294901760, %v55_v11  ;;  %v297_v17 = vsub.f32 %v49_v6, %v261_v10  ;;  %v303_v18 = vsub.f32 %v47_v8, %v263_v12 }
  0x11   :  { %v76_v16 = vsub.f32 %v52_v5, %v577_v9  ;;  %143 = vmatpush.msra.mxu2 %v107_v13  ;;  %175 = vmatpush.msra.mxu3 %v73_v4  ;;  %v108_v19 = vand.u32 4294901760, %v107_v13  ;;  %v114_v20 = vand.u32 4294901760, %v113_v14 }
  0x12   :  { %v84_v21 = vsub.f32 %v55_v11, %v579_v15  ;;  %74 = vmatpush.msra.mxu0 %v73_v4  ;;  %v298_v23 = vand.u32 4294901760, %v297_v17  ;;  %v304_v24 = vand.u32 4294901760, %v303_v18 }
  0x13   :  { %v77_v22 = vand.u32 4294901760, %v76_v16  ;;  %146 = vmatpush.msra.mxu2 %v113_v14  ;;  %v109_v25 = vsub.f32 %v107_v13, %v108_v19  ;;  %v115_v26 = vsub.f32 %v113_v14, %v114_v20 }
  0x14   :  { %206 = vmatpush.msrb.mxu0 %v108_v19  ;;  %149 = vmatmul.f32.vlgmr.msra.gmra.mxu2 %v76_v16  ;;  %v299_v28 = vsub.f32 %v297_v17, %v298_v23  ;;  %v85_v29 = vand.u32 4294901760, %v84_v21  ;;  %v305_v30 = vsub.f32 %v303_v18, %v304_v24 }
  0x15   :  { %179 = vmatmul.f32.vlgmr.msra.gmra.mxu3 %v77_v22  ;;  %v78_v27 = vsub.f32 %v76_v16, %v77_v22  ;;  %262 = vmatpush.msrb.mxu2 %v261_v10  ;;  %v110_v31 = vand.u32 4294901760, %v109_v25  ;;  %v116_v32 = vand.u32 4294901760, %v115_v26 }
  0x16   :  { %210 = vmatpush.msrb.mxu0 %v114_v20  ;;  %v300_v34 = vand.u32 4294901760, %v299_v28  ;;  %v306_v35 = vand.u32 4294901760, %v305_v30  ;;  %v86_v36 = vsub.f32 %v84_v21, %v85_v29 }
  0x17   :  { %v79_v33 = vand.u32 4294901760, %v78_v27  ;;  %111 = vmatpush.msra.mxu1 %v110_v31  ;;  %264 = vmatpush.msrb.mxu2 %v263_v12 }
  0x18   :  { %301 = vmatpush.msrb.mxu3 %v300_v34  ;;  %v87_v37 = vand.u32 4294901760, %v86_v36 }
  0x19   :  { %80 = vmatmul.f32.vlgmr.msra.gmra.mxu0 %v79_v33  ;;  %117 = vmatpush.msra.mxu1 %v116_v32 }
  0x1a   :  { %396 = vmatpush.msra.mxu2 %v298_v23  ;;  %119 = vmatmul.f32.vlgmr.msra.gmra.mxu1 %v577_v9 }
  0x1b   :  { %307 = vmatpush.msrb.mxu3 %v306_v35  ;;  %235 = vmatpush.msrb.mxu1 %v71_v3 }
  0x1c   :  { %333 = vmatpush.msra.mxu0 %v297_v17  ;;  %154 = vmatmul.f32.gmra.mxu2 %v84_v21 }
  0x1d   :  { %185 = vmatmul.f32.gmra.mxu3 %v85_v29  ;;  %237 = vmatpush.msrb.mxu1 %v73_v4 }
  0x1e   :  { %425 = vmatpush.msra.mxu3 %v261_v10  ;;  %400 = vmatpush.msra.mxu2 %v304_v24 }
  0x1f   :  { %363 = vmatpush.msra.mxu1 %v261_v10  ;;  %336 = vmatpush.msra.mxu0 %v303_v18 }
  0x20   :  { %427 = vmatpush.msra.mxu3 %v263_v12 }
  0x21   :  { %88 = vmatmul.f32.gmra.mxu0 %v87_v37  ;;  %365 = vmatpush.msra.mxu1 %v263_v12 }
  0x22   :  { %123 = vmatmul.f32.gmra.mxu1 %v579_v15 }
  0x24   :  { %270 = vmatmul.f32.vlgmr.msrb.gmra.mxu2 %v79_v33 }
  0x25   :  { %309 = vmatmul.f32.vlgmr.msrb.gmra.mxu3 %v577_v9 }
  0x29   :  { %212 = vmatmul.f32.vlgmr.msrb.gmra.mxu0 %v577_v9 }
  0x2a   :  { %239 = vmatmul.f32.vlgmr.msrb.gmra.mxu1 %v577_v9 }
  0x2c   :  { %278 = vmatmul.f32.gmra.mxu2 %v87_v37 }
  0x2d   :  { %313 = vmatmul.f32.gmra.mxu3 %v579_v15 }
  0x31   :  { %216 = vmatmul.f32.gmra.mxu0 %v579_v15 }
  0x32   :  { %243 = vmatmul.f32.gmra.mxu1 %v579_v15 }
  0x34   :  { %402 = vmatmul.f32.vlgmr.msra.gmra.mxu2 %v577_v9 }
  0x35   :  { %429 = vmatmul.f32.vlgmr.msra.gmra.mxu3 %v577_v9 }
  0x39   :  { %339 = vmatmul.f32.vlgmr.msra.gmra.mxu0 %v76_v16 }
  0x3a   :  { %369 = vmatmul.f32.vlgmr.msra.gmra.mxu1 %v77_v22 }
  0x3c   :  { %406 = vmatmul.f32.gmra.mxu2 %v579_v15 }
  0x3d   :  { %433 = vmatmul.f32.gmra.mxu3 %v579_v15 }
  0x41   :  { %344 = vmatmul.f32.gmra.mxu0 %v84_v21 }
  0x42   :  { %375 = vmatmul.f32.gmra.mxu1 %v85_v29 }
  0x96   :  { %v81_v38 = vpop.f32.mrf.mxu0 }
  0x97   :  { %v120_v39 = vpop.f32.mrf.mxu1  ;;  %v150_v40 = vpop.f32.mrf.mxu2 }
  0x98   :  { %v180_v41 = vpop.f32.mrf.mxu3  ;;  %v121_v42 = vadd.f32 %v120_v39, %v81_v38 }
  0x9a   :  { %v151_v46 = vadd.f32 %v150_v40, %v121_v42 }
  0x9c   :  { %v181_v48 = vadd.f32 %v180_v41, %v151_v46 }
  0x9e   :  { %v89_v43 = vpop.f32.mrf.mxu0 }
  0x9f   :  { %v124_v44 = vpop.f32.mrf.mxu1  ;;  %v155_v45 = vpop.f32.mrf.mxu2 }
  0xa0   :  { %v186_v47 = vpop.f32.mrf.mxu3  ;;  %v125_v49 = vadd.f32 %v124_v44, %v89_v43 }
  0xa2   :  { %v156_v54 = vadd.f32 %v155_v45, %v125_v49 }
  0xa4   :  { %v187_v57 = vadd.f32 %v186_v47, %v156_v54 }
  0xa6   :  { %v213_v50 = vpop.f32.mrf.mxu0 }
  0xa7   :  { %v214_v51 = vadd.f32 %v213_v50, %v181_v48  ;;  %v240_v52 = vpop.f32.mrf.mxu1  ;;  %v271_v53 = vpop.f32.mrf.mxu2 }
  0xa8   :  { %v310_v56 = vpop.f32.mrf.mxu3 }
  0xa9   :  { %v241_v55 = vadd.f32 %v240_v52, %v214_v51  ;;  %v311_v0 = vadd.f32 %v310_v56, %v271_v53 }
  0xab   :  { %437 = vst [vmem:[#allocation7] sm:$0xff] %v241_v55 }
  0xae   :  { %v217_v58 = vpop.f32.mrf.mxu0 }
  0xaf   :  { %v218_v59 = vadd.f32 %v217_v58, %v187_v57  ;;  %v244_v60 = vpop.f32.mrf.mxu1  ;;  %v279_v61 = vpop.f32.mrf.mxu2 }
  0xb0   :  { %v314_v63 = vpop.f32.mrf.mxu3 }
  0xb1   :  { %v245_v62 = vadd.f32 %v244_v60, %v218_v59  ;;  %v315_v8 = vadd.f32 %v314_v63, %v279_v61 }
  0xb3   :  { %439 = vst [vmem:[#allocation7 + $0x10] sm:$0xff] %v245_v62 }
  0xb6   :  { %v340_v1 = vpop.f32.mrf.mxu0 }
  0xb7   :  { %v341_v2 = vadd.f32 %v340_v1, %v311_v0  ;;  %v370_v3 = vpop.f32.mrf.mxu1  ;;  %v403_v4 = vpop.f32.mrf.mxu2 }
  0xb8   :  { %v430_v6 = vpop.f32.mrf.mxu3 }
  0xb9   :  { %v371_v5 = vadd.f32 %v370_v3, %v341_v2 }
  0xbb   :  { %v404_v7 = vadd.f32 %v403_v4, %v371_v5 }
  0xbd   :  { %v431_v9 = vadd.f32 %v430_v6, %v404_v7 }
  0xbe   :  { %v345_v10 = vpop.f32.mrf.mxu0 }
  0xbf   :  { %438 = vst [vmem:[#allocation7 + $0x8] sm:$0xff] %v431_v9  ;;  %v346_v11 = vadd.f32 %v345_v10, %v315_v8  ;;  %v376_v12 = vpop.f32.mrf.mxu1  ;;  %v407_v13 = vpop.f32.mrf.mxu2 }
  0xc0   :  { %v434_v15 = vpop.f32.mrf.mxu3 }
  0xc1   :  { %v377_v14 = vadd.f32 %v376_v12, %v346_v11 }
  0xc3   :  { %v408_v16 = vadd.f32 %v407_v13, %v377_v14 }
  0xc5   :  { %v435_v17 = vadd.f32 %v434_v15, %v408_v16 }
  0xc7   :  { %440 = vst [vmem:[#allocation7 + $0x18] sm:$0xff] %v435_v17 }
  0xc8   :  { %453 = dma.vmem_to_hbm [thread:$0]  %s446_s1, 512, %s448_s25, [#allocation4], %s550_s21, %s550_s21, %s551_s22  }
  0xc9   :  { %544 = dma.done.wait [#allocation4], 512  }
  0xca   :  { %545 = vsyncadd [#allocation4], 4294966784 }
  0xcb   :  { %458 = vsyncpa [#allocation3], 1 }
  0xcc   :  { %459 = vsyncpa [#allocation6], 1 }
  0xcd   :  { %460 = vsyncpa [#allocation4], 1 }

</bundles_post_ra>
